<compile_context>
chip_gen: v7x
topology: tpu7x:2x2x1
jax: 0.10.0
libtpu: 0.0.40
codegen_flags: <defaults>
</compile_context>

<pallas_src>
import functools

import jax
import jax.numpy as jnp
from jax import lax
from jax.experimental import pallas as pl
from jax.experimental.pallas import tpu as pltpu


def _round_up(x, m):
    return (x + m - 1) // m * m


def _pick_time_chunk(T, BB, Ip, Hp, max_chunk, vmem_budget=24 << 20):
    """Largest time chunk (<= max_chunk, <= T) whose VMEM footprint fits the budget."""
    fixed = (2 * Ip * Hp + 2 * Hp * Hp + 2 * BB * Hp + 2 * Hp) * 4
    per_tc = (2 * BB * Ip + BB * Hp) * 4  # double-buffered x chunk + xw scratch
    cap = max(1, (vmem_budget - fixed) // per_tc)
    return max(1, min(max_chunk, cap, T))


def rnn_recurrence_kernel(x_ref, wih_ref, whh_ref, bias_ref, h_ref, xw_ref, *,
                          seq_len, time_chunk):
    """One time chunk of the recurrence for one batch shard.

    x_ref   : (Tc, BB, Ip) f32  raw input chunk, time-major, zero padded
    wih_ref : (Ip, Hp)     f32  input->hidden weight (transposed, padded)
    whh_ref : (Hp, Hp)     f32  hidden->hidden weight (transposed, padded)
    bias_ref: (1, Hp)      f32  b_ih + b_hh (padded)
    h_ref   : (BB, Hp)     f32  resident output block == hidden-state carry
    xw_ref  : (Tc, BB, Hp) f32  scratch holding the chunk's projected inputs
    """
    c = pl.program_id(1)  # time-chunk index (sequential / "arbitrary")

    @pl.when(c == 0)
    def _():
        h_ref[...] = jnp.zeros_like(h_ref)

    tc, bb, ip = x_ref.shape
    hp = h_ref.shape[-1]

    # Chunk prologue: ONE big time-parallel MXU matmul for the input projection
    # (the (T, B, Hp) activation never touches HBM) + bias, both kept off the
    # serial per-step dependency chain.
    x2d = x_ref[...].reshape(tc * bb, ip)
    xw_ref[...] = (
        jnp.dot(x2d, wih_ref[...], preferred_element_type=jnp.float32)
        .reshape(tc, bb, hp)
        + bias_ref[...]
    )

    whh = whh_ref[...]            # hoisted: loaded once per chunk
    base = c * time_chunk

    def step(t, h):
        # Serial path per timestep: one small MXU dot + VPU add + EUP tanh.
        pre = xw_ref[t] + jnp.dot(h, whh, preferred_element_type=jnp.float32)
        h_new = jnp.tanh(pre)
        # Mask timesteps past the true sequence length (T is padded up to a
        # multiple of Tc); the scalar select is a free VPU slot.
        return jnp.where(base + t < seq_len, h_new, h)

    # Partial unroll: LLO scheduler visibility without giant bundle streams.
    h_ref[...] = lax.fori_loop(0, tc, step, h_ref[...], unroll=min(8, tc))


@functools.partial(jax.jit, static_argnames=("max_time_chunk",))
def rnn_forward(x, w_ih, w_hh, b_ih, b_hh, w_fc, b_fc, *, max_time_chunk=128):
    """Forward of nn.RNN(I, H, batch_first=True) followed by fc on h_T.

    x: (B, T, I) f32 (batch-first, like the PyTorch module). Returns (B, C) f32.
    """
    B, T, I = x.shape
    H = w_hh.shape[0]

    # Shard the batch over the two v7x TensorCores only when each shard still
    # keeps the MXU reasonably fed; on single-TC v5e/v6e this is never worth it.
    n_bshards = 2 if B >= 128 else 1
    Bp = _round_up(B, 8 * n_bshards)       # sublane multiple per shard
    BB = Bp // n_bshards
    Hp = _round_up(H, 128)                 # lane multiple
    Ip = _round_up(I, 128)                 # lane multiple for the raw x chunk

    Tc = _pick_time_chunk(T, BB, Ip, Hp, max_time_chunk)
    Tp = _round_up(T, Tc)
    n_chunks = Tp // Tc

    f32 = jnp.float32
    # f32 MXU operands: bf16 x bf16 -> f32 dots are rejected by the CPU/interpret
    # dot path, and f32 also keeps the hidden-state recurrence exact.
    wih_t = jnp.zeros((Ip, Hp), f32).at[:I, :H].set(w_ih.T.astype(f32))
    whh_t = jnp.zeros((Hp, Hp), f32).at[:H, :H].set(w_hh.T.astype(f32))
    bias = jnp.zeros((1, Hp), f32).at[0, :H].set((b_ih + b_hh).astype(f32))

    # Time-major, zero-padded raw input (projection is fused into the kernel).
    xt = jnp.transpose(x.astype(f32), (1, 0, 2))                 # (T, B, I)
    xt = jnp.pad(xt, ((0, Tp - T), (0, Bp - B), (0, Ip - I)))     # (Tp, Bp, Ip)

    # VMEM footprint: double-buffered inputs + resident output + xw scratch, with
    # headroom, capped at v7x's 64 MiB physical VMEM.
    vmem_bytes = (2 * Tc * BB * Ip + 2 * Ip * Hp + 2 * Hp * Hp + 2 * Hp
                  + 2 * BB * Hp + Tc * BB * Hp) * 4
    vmem_limit = int(min(max(vmem_bytes * 5 // 4 + (1 << 20), 8 << 20), 64 << 20))

    kernel = functools.partial(rnn_recurrence_kernel, seq_len=T, time_chunk=Tc)

    h_last = pl.pallas_call(
        kernel,
        out_shape=jax.ShapeDtypeStruct((Bp, Hp), f32),
        grid_spec=pltpu.PrefetchScalarGridSpec(
            num_scalar_prefetch=0,
            grid=(n_bshards, n_chunks),
            in_specs=[
                # raw x chunk for this (batch shard, time chunk)
                pl.BlockSpec((Tc, BB, Ip), lambda b, c: (c, b, 0)),
                # weights / bias: constant index_map -> DMA'd once, resident
                pl.BlockSpec((Ip, Hp), lambda b, c: (0, 0)),
                pl.BlockSpec((Hp, Hp), lambda b, c: (0, 0)),
                pl.BlockSpec((1, Hp), lambda b, c: (0, 0)),
            ],
            # lane-dense (BB, 128) resident output == hidden-state accumulator
            out_specs=pl.BlockSpec((BB, Hp), lambda b, c: (b, 0)),
            scratch_shapes=[pltpu.VMEM((Tc, BB, Hp), f32)],
        ),
        compiler_params=pltpu.CompilerParams(
            dimension_semantics=("parallel", "arbitrary"),
            vmem_limit_bytes=vmem_limit,
        ),
    )(xt, wih_t, whh_t, bias)

    # Final Linear on the last hidden state (C=4 < 128 lanes -> keep it in the
    # wrapper so the kernel store stays a full unmasked vreg).
    h_T = h_last[:B, :H]
    return h_T @ w_fc.T.astype(f32) + b_fc.astype(f32)


def rnn_reference(x, w_ih, w_hh, b_ih, b_hh, w_fc, b_fc):
    B, T, I = x.shape
    H = w_hh.shape[0]
    h = jnp.zeros((B, H), jnp.float32)
    for t in range(T):
        h = jnp.tanh(x[:, t, :] @ w_ih.T + h @ w_hh.T + b_ih + b_hh)
    return h @ w_fc.T + b_fc


if __name__ == "__main__":
    # Scaled-down shapes consistent with the module (input_size/hidden/classes),
    # batch-first like nn.RNN(batch_first=True).  T=19 with max_time_chunk=8
    # exercises the multi-chunk grid, resident hidden state, and the padded /
    # masked trailing-timestep path.
    B, T, I, H, C = 4, 19, 256, 64, 4

    key = jax.random.PRNGKey(0)
    kx, k1, k2, k3, k4, k5, k6 = jax.random.split(key, 7)

    bound = 1.0 / (H ** 0.5)
    x = jax.random.normal(kx, (B, T, I), jnp.float32)
    w_ih = jax.random.uniform(k1, (H, I), jnp.float32, -bound, bound)
    w_hh = jax.random.uniform(k2, (H, H), jnp.float32, -bound, bound)
    b_ih = jax.random.uniform(k3, (H,), jnp.float32, -bound, bound)
    b_hh = jax.random.uniform(k4, (H,), jnp.float32, -bound, bound)
    w_fc = jax.random.uniform(k5, (C, H), jnp.float32, -bound, bound)
    b_fc = jax.random.uniform(k6, (C,), jnp.float32, -bound, bound)

    out = rnn_forward(x, w_ih, w_hh, b_ih, b_hh, w_fc, b_fc, max_time_chunk=8)
    out = jax.block_until_ready(out)

    ref = rnn_reference(x, w_ih, w_hh, b_ih, b_hh, w_fc, b_fc)
    assert out.shape == (B, C), out.shape
    # All-f32 recurrence -> tight agreement with the pure-JAX reference.
    assert jnp.allclose(out, ref, atol=1e-3, rtol=1e-3), (out, ref)

    print("KERNEL_OK")
</pallas_src>

<mosaic_0001>
module attributes {stable_mosaic.version = 11 : i64} {
  func.func @rnn_recurrence_kernel(%arg0: i32, %arg1: i32, %arg2: memref<8x8x256xf32, #tpu.memory_space<vmem>>, %arg3: memref<256x128xf32, #tpu.memory_space<vmem>>, %arg4: memref<128x128xf32, #tpu.memory_space<vmem>>, %arg5: memref<1x128xf32, #tpu.memory_space<vmem>>, %arg6: memref<8x128xf32, #tpu.memory_space<vmem>>, %arg7: memref<8x8x128xf32, #tpu.memory_space<vmem>>) attributes {dimension_semantics = [#tpu.dimension_semantics<parallel>, #tpu.dimension_semantics<arbitrary>], iteration_bounds = array<i64: 1, 3>, scalar_prefetch = 0 : i64, scratch_operands = 1 : i64, tpu.core_type = #tpu.core_type<tc>, window_params = [{transform_indices = @transform_0, window_bounds = array<i64: 8, 8, 256>}, {pipeline_mode = #tpu.pipeline_mode<synchronous>, transform_indices = @transform_1, window_bounds = array<i64: 256, 128>}, {pipeline_mode = #tpu.pipeline_mode<synchronous>, transform_indices = @transform_2, window_bounds = array<i64: 128, 128>}, {pipeline_mode = #tpu.pipeline_mode<synchronous>, transform_indices = @transform_3, window_bounds = array<i64: 1, 128>}, {transform_indices = @transform_4, window_bounds = array<i64: 8, 128>}]} {
    %c0_i32 = arith.constant 0 : i32
    %0 = arith.cmpi eq, %arg1, %c0_i32 : i32
    %1 = arith.extui %0 : i1 to i32
    %c0_i32_0 = arith.constant 0 : i32
    %2 = arith.cmpi ne, %1, %c0_i32_0 : i32
    scf.if %2 {
      %cst_49 = arith.constant 0.000000e+00 : f32
      %89 = vector.broadcast %cst_49 : f32 to vector<8x128xf32>
      %c0_50 = arith.constant 0 : index
      %c0_51 = arith.constant 0 : index
      %90 = vector.load %arg6[%c0_50, %c0_51] : memref<8x128xf32, #tpu.memory_space<vmem>>, vector<8x128xf32>
      tpu.vector_store %arg6[%c0_50, %c0_51], %89 {strides = array<i32>} : memref<8x128xf32, #tpu.memory_space<vmem>>, vector<8x128xf32>,
    } else {
    }
    %c0 = arith.constant 0 : index
    %c0_1 = arith.constant 0 : index
    %c0_2 = arith.constant 0 : index
    %3 = vector.load %arg2[%c0, %c0_1, %c0_2] : memref<8x8x256xf32, #tpu.memory_space<vmem>>, vector<8x8x256xf32>
    %4 = vector.shape_cast %3 : vector<8x8x256xf32> to vector<64x256xf32>
    %c0_3 = arith.constant 0 : index
    %c0_4 = arith.constant 0 : index
    %5 = vector.load %arg3[%c0_3, %c0_4] : memref<256x128xf32, #tpu.memory_space<vmem>>, vector<256x128xf32>
    %cst = arith.constant dense<0.000000e+00> : vector<64x128xf32>
    %6 = tpu.matmul %4, %5, %cst {dimension_numbers = #tpu.dot_dimension_numbers<[1], [0], [0], [1], [0, 0, 1, 1], [], []>} : vector<64x256xf32>, vector<256x128xf32>, vector<64x128xf32> -> vector<64x128xf32>
    %7 = vector.shape_cast %6 : vector<64x128xf32> to vector<8x8x128xf32>
    %c0_5 = arith.constant 0 : index
    %c0_6 = arith.constant 0 : index
    %8 = vector.load %arg5[%c0_5, %c0_6] : memref<1x128xf32, #tpu.memory_space<vmem>>, vector<1x128xf32>
    %9 = vector.shape_cast %8 : vector<1x128xf32> to vector<1x1x128xf32>
    %10 = vector.broadcast %9 : vector<1x1x128xf32> to vector<8x8x128xf32>
    %11 = arith.addf %7, %10 : vector<8x8x128xf32>
    %c0_7 = arith.constant 0 : index
    %c0_8 = arith.constant 0 : index
    %c0_9 = arith.constant 0 : index
    %12 = vector.load %arg7[%c0_7, %c0_8, %c0_9] : memref<8x8x128xf32, #tpu.memory_space<vmem>>, vector<8x8x128xf32>
    tpu.vector_store %arg7[%c0_7, %c0_8, %c0_9], %11 {strides = array<i32>} : memref<8x8x128xf32, #tpu.memory_space<vmem>>, vector<8x8x128xf32>,
    %c0_10 = arith.constant 0 : index
    %c0_11 = arith.constant 0 : index
    %13 = vector.load %arg4[%c0_10, %c0_11] : memref<128x128xf32, #tpu.memory_space<vmem>>, vector<128x128xf32>
    %c8_i32 = arith.constant 8 : i32
    %14 = arith.muli %arg1, %c8_i32 : i32
    %c0_12 = arith.constant 0 : index
    %c0_13 = arith.constant 0 : index
    %15 = vector.load %arg6[%c0_12, %c0_13] : memref<8x128xf32, #tpu.memory_space<vmem>>, vector<8x128xf32>
    %c0_i32_14 = arith.constant 0 : i32
    %16 = arith.index_cast %c0_i32_14 : i32 to index
    %c0_15 = arith.constant 0 : index
    %c0_16 = arith.constant 0 : index
    %17 = vector.load %arg7[%16, %c0_15, %c0_16] : memref<8x8x128xf32, #tpu.memory_space<vmem>>, vector<1x8x128xf32>
    %18 = vector.shape_cast %17 : vector<1x8x128xf32> to vector<8x128xf32>
    %cst_17 = arith.constant dense<0.000000e+00> : vector<8x128xf32>
    %19 = tpu.matmul %15, %13, %cst_17 {dimension_numbers = #tpu.dot_dimension_numbers<[1], [0], [0], [1], [0, 0, 1, 1], [], []>} : vector<8x128xf32>, vector<128x128xf32>, vector<8x128xf32> -> vector<8x128xf32>
    %20 = arith.addf %18, %19 : vector<8x128xf32>
    %21 = math.tanh %20 : vector<8x128xf32>
    %22 = arith.addi %14, %c0_i32_14 : i32
    %c19_i32 = arith.constant 19 : i32
    %23 = arith.cmpi slt, %22, %c19_i32 : i32
    %24 = arith.select %23, %21, %15 : vector<8x128xf32>
    %c1_i32 = arith.constant 1 : i32
    %25 = arith.index_cast %c1_i32 : i32 to index
    %c0_18 = arith.constant 0 : index
    %c0_19 = arith.constant 0 : index
    %26 = vector.load %arg7[%25, %c0_18, %c0_19] : memref<8x8x128xf32, #tpu.memory_space<vmem>>, vector<1x8x128xf32>
    %27 = vector.shape_cast %26 : vector<1x8x128xf32> to vector<8x128xf32>
    %cst_20 = arith.constant dense<0.000000e+00> : vector<8x128xf32>
    %28 = tpu.matmul %24, %13, %cst_20 {dimension_numbers = #tpu.dot_dimension_numbers<[1], [0], [0], [1], [0, 0, 1, 1], [], []>} : vector<8x128xf32>, vector<128x128xf32>, vector<8x128xf32> -> vector<8x128xf32>
    %29 = arith.addf %27, %28 : vector<8x128xf32>
    %30 = math.tanh %29 : vector<8x128xf32>
    %31 = arith.addi %14, %c1_i32 : i32
    %c19_i32_21 = arith.constant 19 : i32
    %32 = arith.cmpi slt, %31, %c19_i32_21 : i32
    %33 = arith.select %32, %30, %24 : vector<8x128xf32>
    %c2_i32 = arith.constant 2 : i32
    %34 = arith.index_cast %c2_i32 : i32 to index
    %c0_22 = arith.constant 0 : index
    %c0_23 = arith.constant 0 : index
    %35 = vector.load %arg7[%34, %c0_22, %c0_23] : memref<8x8x128xf32, #tpu.memory_space<vmem>>, vector<1x8x128xf32>
    %36 = vector.shape_cast %35 : vector<1x8x128xf32> to vector<8x128xf32>
    %cst_24 = arith.constant dense<0.000000e+00> : vector<8x128xf32>
    %37 = tpu.matmul %33, %13, %cst_24 {dimension_numbers = #tpu.dot_dimension_numbers<[1], [0], [0], [1], [0, 0, 1, 1], [], []>} : vector<8x128xf32>, vector<128x128xf32>, vector<8x128xf32> -> vector<8x128xf32>
    %38 = arith.addf %36, %37 : vector<8x128xf32>
    %39 = math.tanh %38 : vector<8x128xf32>
    %40 = arith.addi %14, %c2_i32 : i32
    %c19_i32_25 = arith.constant 19 : i32
    %41 = arith.cmpi slt, %40, %c19_i32_25 : i32
    %42 = arith.select %41, %39, %33 : vector<8x128xf32>
    %c3_i32 = arith.constant 3 : i32
    %43 = arith.index_cast %c3_i32 : i32 to index
    %c0_26 = arith.constant 0 : index
    %c0_27 = arith.constant 0 : index
    %44 = vector.load %arg7[%43, %c0_26, %c0_27] : memref<8x8x128xf32, #tpu.memory_space<vmem>>, vector<1x8x128xf32>
    %45 = vector.shape_cast %44 : vector<1x8x128xf32> to vector<8x128xf32>
    %cst_28 = arith.constant dense<0.000000e+00> : vector<8x128xf32>
    %46 = tpu.matmul %42, %13, %cst_28 {dimension_numbers = #tpu.dot_dimension_numbers<[1], [0], [0], [1], [0, 0, 1, 1], [], []>} : vector<8x128xf32>, vector<128x128xf32>, vector<8x128xf32> -> vector<8x128xf32>
    %47 = arith.addf %45, %46 : vector<8x128xf32>
    %48 = math.tanh %47 : vector<8x128xf32>
    %49 = arith.addi %14, %c3_i32 : i32
    %c19_i32_29 = arith.constant 19 : i32
    %50 = arith.cmpi slt, %49, %c19_i32_29 : i32
    %51 = arith.select %50, %48, %42 : vector<8x128xf32>
    %c4_i32 = arith.constant 4 : i32
    %52 = arith.index_cast %c4_i32 : i32 to index
    %c0_30 = arith.constant 0 : index
    %c0_31 = arith.constant 0 : index
    %53 = vector.load %arg7[%52, %c0_30, %c0_31] : memref<8x8x128xf32, #tpu.memory_space<vmem>>, vector<1x8x128xf32>
    %54 = vector.shape_cast %53 : vector<1x8x128xf32> to vector<8x128xf32>
    %cst_32 = arith.constant dense<0.000000e+00> : vector<8x128xf32>
    %55 = tpu.matmul %51, %13, %cst_32 {dimension_numbers = #tpu.dot_dimension_numbers<[1], [0], [0], [1], [0, 0, 1, 1], [], []>} : vector<8x128xf32>, vector<128x128xf32>, vector<8x128xf32> -> vector<8x128xf32>
    %56 = arith.addf %54, %55 : vector<8x128xf32>
    %57 = math.tanh %56 : vector<8x128xf32>
    %58 = arith.addi %14, %c4_i32 : i32
    %c19_i32_33 = arith.constant 19 : i32
    %59 = arith.cmpi slt, %58, %c19_i32_33 : i32
    %60 = arith.select %59, %57, %51 : vector<8x128xf32>
    %c5_i32 = arith.constant 5 : i32
    %61 = arith.index_cast %c5_i32 : i32 to index
    %c0_34 = arith.constant 0 : index
    %c0_35 = arith.constant 0 : index
    %62 = vector.load %arg7[%61, %c0_34, %c0_35] : memref<8x8x128xf32, #tpu.memory_space<vmem>>, vector<1x8x128xf32>
    %63 = vector.shape_cast %62 : vector<1x8x128xf32> to vector<8x128xf32>
    %cst_36 = arith.constant dense<0.000000e+00> : vector<8x128xf32>
    %64 = tpu.matmul %60, %13, %cst_36 {dimension_numbers = #tpu.dot_dimension_numbers<[1], [0], [0], [1], [0, 0, 1, 1], [], []>} : vector<8x128xf32>, vector<128x128xf32>, vector<8x128xf32> -> vector<8x128xf32>
    %65 = arith.addf %63, %64 : vector<8x128xf32>
    %66 = math.tanh %65 : vector<8x128xf32>
    %67 = arith.addi %14, %c5_i32 : i32
    %c19_i32_37 = arith.constant 19 : i32
    %68 = arith.cmpi slt, %67, %c19_i32_37 : i32
    %69 = arith.select %68, %66, %60 : vector<8x128xf32>
    %c6_i32 = arith.constant 6 : i32
    %70 = arith.index_cast %c6_i32 : i32 to index
    %c0_38 = arith.constant 0 : index
    %c0_39 = arith.constant 0 : index
    %71 = vector.load %arg7[%70, %c0_38, %c0_39] : memref<8x8x128xf32, #tpu.memory_space<vmem>>, vector<1x8x128xf32>
    %72 = vector.shape_cast %71 : vector<1x8x128xf32> to vector<8x128xf32>
    %cst_40 = arith.constant dense<0.000000e+00> : vector<8x128xf32>
    %73 = tpu.matmul %69, %13, %cst_40 {dimension_numbers = #tpu.dot_dimension_numbers<[1], [0], [0], [1], [0, 0, 1, 1], [], []>} : vector<8x128xf32>, vector<128x128xf32>, vector<8x128xf32> -> vector<8x128xf32>
    %74 = arith.addf %72, %73 : vector<8x128xf32>
    %75 = math.tanh %74 : vector<8x128xf32>
    %76 = arith.addi %14, %c6_i32 : i32
    %c19_i32_41 = arith.constant 19 : i32
    %77 = arith.cmpi slt, %76, %c19_i32_41 : i32
    %78 = arith.select %77, %75, %69 : vector<8x128xf32>
    %c7_i32 = arith.constant 7 : i32
    %79 = arith.index_cast %c7_i32 : i32 to index
    %c0_42 = arith.constant 0 : index
    %c0_43 = arith.constant 0 : index
    %80 = vector.load %arg7[%79, %c0_42, %c0_43] : memref<8x8x128xf32, #tpu.memory_space<vmem>>, vector<1x8x128xf32>
    %81 = vector.shape_cast %80 : vector<1x8x128xf32> to vector<8x128xf32>
    %cst_44 = arith.constant dense<0.000000e+00> : vector<8x128xf32>
    %82 = tpu.matmul %78, %13, %cst_44 {dimension_numbers = #tpu.dot_dimension_numbers<[1], [0], [0], [1], [0, 0, 1, 1], [], []>} : vector<8x128xf32>, vector<128x128xf32>, vector<8x128xf32> -> vector<8x128xf32>
    %83 = arith.addf %81, %82 : vector<8x128xf32>
    %84 = math.tanh %83 : vector<8x128xf32>
    %85 = arith.addi %14, %c7_i32 : i32
    %c19_i32_45 = arith.constant 19 : i32
    %86 = arith.cmpi slt, %85, %c19_i32_45 : i32
    %87 = arith.select %86, %84, %78 : vector<8x128xf32>
    %c8_i32_46 = arith.constant 8 : i32
    %c0_47 = arith.constant 0 : index
    %c0_48 = arith.constant 0 : index
    %88 = vector.load %arg6[%c0_47, %c0_48] : memref<8x128xf32, #tpu.memory_space<vmem>>, vector<8x128xf32>
    tpu.vector_store %arg6[%c0_47, %c0_48], %87 {strides = array<i32>} : memref<8x128xf32, #tpu.memory_space<vmem>>, vector<8x128xf32>,
    return
  }
  func.func @transform_0(%arg0: i32, %arg1: i32) -> (i32, i32, i32) {
    %c0_i32 = arith.constant 0 : i32
    %c0_i32_0 = arith.constant 0 : i32
    return %arg1, %arg0, %c0_i32 : i32, i32, i32
  }
  func.func @transform_1(%arg0: i32, %arg1: i32) -> (i32, i32) {
    %c0_i32 = arith.constant 0 : i32
    %c0_i32_0 = arith.constant 0 : i32
    %c0_i32_1 = arith.constant 0 : i32
    return %c0_i32, %c0_i32_0 : i32, i32
  }
  func.func @transform_2(%arg0: i32, %arg1: i32) -> (i32, i32) {
    %c0_i32 = arith.constant 0 : i32
    %c0_i32_0 = arith.constant 0 : i32
    %c0_i32_1 = arith.constant 0 : i32
    return %c0_i32, %c0_i32_0 : i32, i32
  }
  func.func @transform_3(%arg0: i32, %arg1: i32) -> (i32, i32) {
    %c0_i32 = arith.constant 0 : i32
    %c0_i32_0 = arith.constant 0 : i32
    %c0_i32_1 = arith.constant 0 : i32
    return %c0_i32, %c0_i32_0 : i32, i32
  }
  func.func @transform_4(%arg0: i32, %arg1: i32) -> (i32, i32) {
    %c0_i32 = arith.constant 0 : i32
    %c0_i32_0 = arith.constant 0 : i32
    return %arg0, %c0_i32 : i32, i32
  }
}

</mosaic_0001>

<bundles_post_ra>
// kernel: rnn_forward.1
= control target key start
LH: loop header
LB: loop body
LE: loop exit
PB: predicated region body
PF: predicated region fallthrough
CT: control target
= control target key end

     0   :  { %s1940_s15 = smov 0   ;;  %s1942_s16 = smov 0   ;;  %s2348_s0 = inlined_call_operand.vmem [shape: f32[24,8,256], index: 0, kind: input, shape index: {}]   ;;  %s2349_s1 = inlined_call_operand.vmem [shape: f32[256,128], index: 1, kind: input, shape index: {}]   ;;  %s2350_s2 = inlined_call_operand.vmem [shape: f32[128,128], index: 2, kind: input, shape index: {}]   ;;  %s2351_s3 = inlined_call_operand.vmem [shape: f32[1,128], index: 3, kind: input, shape index: {}]   ;;  %s2352_s4 = inlined_call_operand.vmem [shape: f32[8,128], index: 4, kind: output, shape index: {}]  }
   0x1   :  { %s1944_s17 = smov 0  }
   0x2 LB: > { %s23_s18 = sadd.s32 1, %s1905_s16  ;;  %p1136_p0 = scmp.ge.s32.totalorder %s1909_s17, 1  ;;  %s1909_s17 = sphi %s1944_s17, %s14_s17   ;;  %s1905_s16 = sphi %s1942_s16, %s2354_s16   ;;  %s1901_s15 = sphi %s1940_s15, %s2353_s15  }
   0x3   : > { %p24_p1 = scmp.ge.s32.totalorder %s23_s18, 3  ;;  %p182_p2 = scmp.lt.s32.totalorder %s1909_s17, 4 }
   0x5   : > { %s2356_s18 = smov (%p24_p1, %s23_s18), 0  ;;  %p183_p3 = pnand %p1136_p0, %p182_p2 }
   0x6   : > { %s1958_s19 = sshll.u32 (!%p183_p3), %s1901_s15, 3  ;;  %p1140_p5 = scmp.ne.s32.totalorder (!%p183_p3), %s1901_s15, 0 }
   0x7   : > { %186 = sbr.rel (%p183_p3) target bundleno = 1871 (0x74f), region = 36  ;;  %p213_p4 = scmp.lt.s32.totalorder (!%p183_p3), %s1958_s19, 23 }
   0xe   : > { %s214_s20 = scalar_select %p213_p4, %s1958_s19, 23 }
   0xf   : > { %230 = sbr.rel (%p1140_p5) target bundleno = 22 (0x16), region = 40  ;;  %v1911_v0 = vmov (!%p1140_p5), 0.0  }
  0x10   : > { %s1146_s21 = sshll.u32 %s214_s20, 4  ;;  %231 = vst [vmem:[%s2352_s4] sm:$0xff] (!%p1140_p5), %v1911_v0 }
  0x11   : > { %s1965_s24 = scalar_lea.vmem %s2348_s0, %s1146_s21 }
  0x16 PF: > { %v264_v1 = vld [vmem:[%s2349_s1 + $0x80] sm:$0xff]  ;;  %v265_v2 = vld [vmem:[%s2349_s1 + $0x88] sm:$0xff]  ;;  %v266_v6 = vld [vmem:[%s2349_s1 + $0x90] sm:$0xff]  ;;  %v1912_v8 = vmov 0.0|0.0   ;;  %vm1913_vm0 = vmmov 0   ;;  %v1914_v9 = vmov 0.0  }
  0x17   : > { %v248_v3 = vld [vmem:[%s2349_s1] sm:$0xff]  ;;  %v1619_v4 = vpack.c.bf16 %v265_v2, %v264_v1  ;;  %v249_v5 = vld [vmem:[%s2349_s1 + $0x8] sm:$0xff]  ;;  %v267_v7 = vld [vmem:[%s2349_s1 + $0x98] sm:$0xff]  ;;  %1651 = vmatprep.subr.bf16.mxu1 %v1912_v8  ;;  %1371 = vmatprep.mubr.msk.f32.mxu1 %vm1913_vm0, %v1914_v9  ;;  %p499_p6 = scmp.lt.s32.totalorder %s1958_s19, 19  ;;  %s578_s21 = sadd.s32 1, %s1958_s19 }
  0x18   : > { %v1621_v10 = vpack.c.bf16 %v249_v5, %v248_v3  ;;  %v1623_v11 = vpack.c.bf16 %v267_v7, %v266_v6  ;;  %v250_v12 = vld [vmem:[%s2349_s1 + $0x10] sm:$0xff]  ;;  %v251_v13 = vld [vmem:[%s2349_s1 + $0x18] sm:$0xff]  ;;  %v408_v14 = vld [vmem:[%s2350_s2] sm:$0xff]  ;;  %p579_p7 = scmp.lt.s32.totalorder %s578_s21, 19  ;;  %s658_s23 = sadd.s32 2, %s1958_s19 }
  0x19   : > { %1620 = vmatprep.subr.bf16.mxu0 %v1619_v4  ;;  %v409_v15 = vld [vmem:[%s2350_s2 + $0x8] sm:$0xff]  ;;  %v268_v16 = vld [vmem:[%s2349_s1 + $0xa0] sm:$0xff]  ;;  %v1625_v18 = vpack.c.bf16 %v251_v13, %v250_v12  ;;  %v410_v20 = vld [vmem:[%s2350_s2 + $0x10] sm:$0xff]  ;;  %p659_p8 = scmp.lt.s32.totalorder %s658_s23, 19  ;;  %s738_s26 = sadd.s32 3, %s1958_s19 }
  0x1a   : > { %v269_v17 = vld [vmem:[%s2349_s1 + $0xa8] sm:$0xff]  ;;  %1622 = vmatpush3.bf16.msra.mxu0 %v1621_v10  ;;  %v2009_v19 = vpack.c.bf16 %v409_v15, %v408_v14  ;;  %v252_v22 = vld [vmem:[%s2349_s1 + $0x20] sm:$0xff]  ;;  %v411_v24 = vld [vmem:[%s2350_s2 + $0x18] sm:$0xff]  ;;  %s580_s22 = scalar_select %p579_p7, 1, 0 }
  0x1b   : > { %1624 = vmatprep.subr.bf16.mxu0 %v1623_v11  ;;  %v1627_v21 = vpack.c.bf16 %v269_v17, %v268_v16  ;;  %v253_v23 = vld [vmem:[%s2349_s1 + $0x28] sm:$0xff]  ;;  %v2024_v25 = vpack.c.bf16 %v411_v24, %v410_v20  ;;  %v270_v26 = vld [vmem:[%s2349_s1 + $0xb0] sm:$0xff]  ;;  %v271_v27 = vld [vmem:[%s2349_s1 + $0xb8] sm:$0xff]  ;;  %s660_s25 = scalar_select %p659_p8, 1, 0 }
  0x1c   : > { %1653 = vmatpush3.bf16.msra.mxu1 %v2009_v19  ;;  %v412_v28 = vld [vmem:[%s2350_s2 + $0x20] sm:$0xff]  ;;  %v413_v29 = vld [vmem:[%s2350_s2 + $0x28] sm:$0xff]  ;;  %v1629_v30 = vpack.c.bf16 %v253_v23, %v252_v22  ;;  %v1631_v31 = vpack.c.bf16 %v271_v27, %v270_v26  ;;  %v254_v32 = vld [vmem:[%s2349_s1 + $0x30] sm:$0xff]  ;;  %p739_p9 = scmp.lt.s32.totalorder %s738_s26, 19  ;;  %s818_s28 = sadd.s32 4, %s1958_s19 }
  0x1d   : > { %1654 = vmatprep.subr.bf16.mxu1 %v1912_v8  ;;  %v255_v33 = vld [vmem:[%s2349_s1 + $0x38] sm:$0xff]  ;;  %v2046_v34 = vpack.c.bf16 %v413_v29, %v412_v28  ;;  %v272_v35 = vld [vmem:[%s2349_s1 + $0xc0] sm:$0xff]  ;;  %v273_v36 = vld [vmem:[%s2349_s1 + $0xc8] sm:$0xff]  ;;  %p819_p10 = scmp.lt.s32.totalorder %s818_s28, 19  ;;  %s898_s30 = sadd.s32 5, %s1958_s19 }
  0x1e   : > { %1626 = vmatpush3.bf16.msra.mxu0 %v1625_v18  ;;  %v414_v37 = vld [vmem:[%s2350_s2 + $0x30] sm:$0xff]  ;;  %v415_v38 = vld [vmem:[%s2350_s2 + $0x38] sm:$0xff]  ;;  %v1633_v39 = vpack.c.bf16 %v255_v33, %v254_v32  ;;  %v1635_v40 = vpack.c.bf16 %v273_v36, %v272_v35  ;;  %v256_v41 = vld [vmem:[%s2349_s1 + $0x40] sm:$0xff]  ;;  %s740_s27 = scalar_select %p739_p9, 1, 0 }
  0x1f   : > { %1628 = vmatprep.subr.bf16.mxu0 %v1627_v21  ;;  %v257_v42 = vld [vmem:[%s2349_s1 + $0x48] sm:$0xff]  ;;  %v2068_v43 = vpack.c.bf16 %v415_v38, %v414_v37  ;;  %v274_v44 = vld [vmem:[%s2349_s1 + $0xd0] sm:$0xff]  ;;  %v275_v45 = vld [vmem:[%s2349_s1 + $0xd8] sm:$0xff]  ;;  %s820_s29 = scalar_select %p819_p10, 1, 0 }
  0x20   : > { %1656 = vmatpush3.bf16.msra.mxu1 %v2024_v25  ;;  %v416_v46 = vld [vmem:[%s2350_s2 + $0x40] sm:$0xff]  ;;  %v417_v47 = vld [vmem:[%s2350_s2 + $0x48] sm:$0xff]  ;;  %v1637_v49 = vpack.c.bf16 %v257_v42, %v256_v41  ;;  %v1639_v50 = vpack.c.bf16 %v275_v45, %v274_v44  ;;  %v258_v51 = vld [vmem:[%s2349_s1 + $0x50] sm:$0xff]  ;;  %p899_p11 = scmp.lt.s32.totalorder %s898_s30, 19  ;;  %s978_s6 = sadd.s32 6, %s1958_s19 }
  0x21   : > { %1657 = vmatprep.subr.bf16.mxu1 %v1912_v8  ;;  %v233_v48 = vld [vmem:[%s1965_s24 + $0x8] sm:$0xff]  ;;  %v259_v52 = vld [vmem:[%s2349_s1 + $0x58] sm:$0xff]  ;;  %v2091_v53 = vpack.c.bf16 %v417_v47, %v416_v46  ;;  %v276_v54 = vld [vmem:[%s2349_s1 + $0xe0] sm:$0xff]  ;;  %p979_p12 = scmp.lt.s32.totalorder %s978_s6, 19  ;;  %s1058_s8 = sadd.s32 7, %s1958_s19 }
  0x22   : > { %1630 = vmatpush3.bf16.msra.mxu0 %v1629_v30  ;;  %344 = vmatprep.mubr.f32.mxu0 %v233_v48  ;;  %v277_v55 = vld [vmem:[%s2349_s1 + $0xe8] sm:$0xff]  ;;  %v418_v56 = vld [vmem:[%s2350_s2 + $0x50] sm:$0xff]  ;;  %v419_v57 = vld [vmem:[%s2350_s2 + $0x58] sm:$0xff]  ;;  %v1641_v58 = vpack.c.bf16 %v259_v52, %v258_v51  ;;  %s900_s5 = scalar_select %p899_p11, 1, 0 }
  0x23   : > { %1632 = vmatprep.subr.bf16.mxu0 %v1631_v31  ;;  %v1643_v59 = vpack.c.bf16 %v277_v55, %v276_v54  ;;  %v260_v60 = vld [vmem:[%s2349_s1 + $0x60] sm:$0xff]  ;;  %v261_v61 = vld [vmem:[%s2349_s1 + $0x68] sm:$0xff]  ;;  %v2113_v62 = vpack.c.bf16 %v419_v57, %v418_v56  ;;  %v278_v63 = vld [vmem:[%s2349_s1 + $0xf0] sm:$0xff]  ;;  %s980_s7 = scalar_select %p979_p12, 1, 0 }
  0x24   : > { %1659 = vmatpush3.bf16.msra.mxu1 %v2046_v34  ;;  %v279_v0 = vld [vmem:[%s2349_s1 + $0xf8] sm:$0xff]  ;;  %v420_v1 = vld [vmem:[%s2350_s2 + $0x60] sm:$0xff]  ;;  %v421_v2 = vld [vmem:[%s2350_s2 + $0x68] sm:$0xff]  ;;  %v1645_v3 = vpack.c.bf16 %v261_v61, %v260_v60  ;;  %p1059_p13 = scmp.lt.s32.totalorder %s1058_s8, 19 }
  0x25   : > { %1660 = vmatprep.subr.bf16.mxu1 %v1912_v8  ;;  %v1647_v4 = vpack.c.bf16 %v279_v0, %v278_v63  ;;  %v262_v5 = vld [vmem:[%s2349_s1 + $0x70] sm:$0xff]  ;;  %v263_v6 = vld [vmem:[%s2349_s1 + $0x78] sm:$0xff]  ;;  %v2135_v7 = vpack.c.bf16 %v421_v2, %v420_v1  ;;  %v232_v14 = vld [vmem:[%s1965_s24] sm:$0xff] }
  0x26   : > { %1634 = vmatpush3.bf16.msra.mxu0 %v1633_v39  ;;  %v422_v10 = vld [vmem:[%s2350_s2 + $0x70] sm:$0xff]  ;;  %v423_v11 = vld [vmem:[%s2350_s2 + $0x78] sm:$0xff]  ;;  %v1649_v12 = vpack.c.bf16 %v263_v6, %v262_v5  ;;  %v2155_v16 = vld [vmem:[%s2352_s4] sm:$0xff]  ;;  %s1060_s9 = scalar_select %p1059_p13, 1, 0 }
  0x27   : > { %1636 = vmatprep.subr.bf16.mxu0 %v1635_v40  ;;  %v2145_v13 = vpack.c.bf16 %v423_v11, %v422_v10  ;;  %v235_v15 = vld [vmem:[%s1965_s24 + $0x18] sm:$0xff]  ;;  %v234_v17 = vld [vmem:[%s1965_s24 + $0x10] sm:$0xff]  ;;  %v237_v18 = vld [vmem:[%s1965_s24 + $0x28] sm:$0xff]  ;;  %v581_v11 = vstv %s580_s22 }
  0x28   : > { %1662 = vmatpush3.bf16.msra.mxu1 %v2068_v43  ;;  %v236_v20 = vld [vmem:[%s1965_s24 + $0x20] sm:$0xff]  ;;  %v239_v21 = vld [vmem:[%s1965_s24 + $0x38] sm:$0xff]  ;;  %v238_v22 = vld [vmem:[%s1965_s24 + $0x30] sm:$0xff]  ;;  %vm582_vm2 = vcmp.eq.s32.totalorder %v581_v11, 1 }
  0x29   : > { %1663 = vmatprep.subr.bf16.mxu1 %v1912_v8  ;;  %v241_v23 = vld [vmem:[%s1965_s24 + $0x48] sm:$0xff]  ;;  %v240_v24 = vld [vmem:[%s1965_s24 + $0x40] sm:$0xff]  ;;  %v243_v26 = vld [vmem:[%s1965_s24 + $0x58] sm:$0xff] }
  0x2a   : > { %1638 = vmatpush3.bf16.msra.mxu0 %v1637_v49  ;;  %v242_v27 = vld [vmem:[%s1965_s24 + $0x50] sm:$0xff]  ;;  %v245_v28 = vld [vmem:[%s1965_s24 + $0x68] sm:$0xff]  ;;  %v244_v29 = vld [vmem:[%s1965_s24 + $0x60] sm:$0xff] }
  0x2b   : > { %1640 = vmatprep.subr.bf16.mxu0 %v1639_v50  ;;  %v247_v30 = vld [vmem:[%s1965_s24 + $0x78] sm:$0xff]  ;;  %v246_v31 = vld [vmem:[%s1965_s24 + $0x70] sm:$0xff]  ;;  %v2211_v35 = vld [vmem:[%s2351_s3] ss:$0 sm:$0xff]  ;;  %s500_s24 = scalar_select %p499_p6, 1, 0 }
  0x2c   : > { %1665 = vmatpush3.bf16.msra.mxu1 %v2091_v53 }
  0x2d   : > { %1666 = vmatprep.subr.bf16.mxu1 %v1912_v8  ;;  %v501_v49 = vstv %s500_s24 }
  0x2e   : > { %1642 = vmatpush3.bf16.msra.mxu0 %v1641_v58  ;;  %vm502_vm1 = vcmp.eq.s32.totalorder %v501_v49, 1  ;;  %v1061_v49 = vstv %s1060_s9 }
  0x2f   : > { %1644 = vmatprep.subr.bf16.mxu0 %v1643_v59  ;;  %vm1062_vm8 = vcmp.eq.s32.totalorder %v1061_v49, 1 }
  0x30   : > { %1668 = vmatpush3.bf16.msra.mxu1 %v2113_v62 }
  0x31   : > { %1669 = vmatprep.subr.bf16.mxu1 %v1912_v8 }
  0x32   : > { %1646 = vmatpush3.bf16.msra.mxu0 %v1645_v3 }
  0x33   : > { %1648 = vmatprep.subr.bf16.mxu0 %v1647_v4 }
  0x34   : > { %1671 = vmatpush3.bf16.msra.mxu1 %v2135_v7 }
  0x35   : > { %1672 = vmatprep.subr.bf16.mxu1 %v1912_v8 }
  0x36   : > { %1650 = vmatpush3.bf16.msra.mxu0 %v1649_v12 }
  0x37   : > { %1675 = vmatprep.subr.bf16.mxu0 %v1912_v8 }
  0x38   : > { %1674 = vmatpush3.bf16.msra.mxu1 %v2145_v13 }
  0x39   : > { %345 = vmatmul.mubr.f32.vlgmr.msra.gmra.mrb[0].mxu0 %v232_v14  ;;  %1699 = vmatprep.subr.bf16.mxu1 %v1912_v8 }
  0x3a   : > { %1677 = vmatpush3.bf16.msra.mxu0 %v2009_v19  ;;  %349 = vmatprep.mubr.f32.mxu0 %v235_v15 }
  0x3b   : > { %1372 = vmatmul.mubr.f32.vlgmr.msra.gmra.mrb[0].mxu1 %v2155_v16  ;;  %1678 = vmatprep.subr.bf16.mxu0 %v1912_v8 }
  0x3c   : > { %1701 = vmatpush3.bf16.msra.mxu1 %v2009_v19  ;;  %1441 = vmatprep.mubr.msk.f32.mxu1 %vm1913_vm0, %v1914_v9 }
  0x3d   : > { %350 = vmatmul.mubr.f32.gmra.mrb[2].mxu0 %v234_v17  ;;  %1702 = vmatprep.subr.bf16.mxu1 %v1912_v8 }
  0x3e   : > { %1680 = vmatpush3.bf16.msra.mxu0 %v2024_v25  ;;  %354 = vmatprep.mubr.f32.mxu0 %v237_v18 }
  0x3f   : > { %1681 = vmatprep.subr.bf16.mxu0 %v1912_v8 }
  0x40   : > { %1704 = vmatpush3.bf16.msra.mxu1 %v2024_v25 }
  0x41   : > { %355 = vmatmul.mubr.f32.gmra.mrb[4].mxu0 %v236_v20  ;;  %1705 = vmatprep.subr.bf16.mxu1 %v1912_v8  ;;  %v661_v20 = vstv %s660_s25 }
  0x42   : > { %1683 = vmatpush3.bf16.msra.mxu0 %v2046_v34  ;;  %359 = vmatprep.mubr.f32.mxu0 %v239_v21  ;;  %vm662_vm3 = vcmp.eq.s32.totalorder %v661_v20, 1 }
  0x43   : > { %1684 = vmatprep.subr.bf16.mxu0 %v1912_v8 }
  0x44   : > { %1707 = vmatpush3.bf16.msra.mxu1 %v2046_v34 }
  0x45   : > { %360 = vmatmul.mubr.f32.gmra.mrb[6].mxu0 %v238_v22  ;;  %1708 = vmatprep.subr.bf16.mxu1 %v1912_v8 }
  0x46   : > { %1686 = vmatpush3.bf16.msra.mxu0 %v2068_v43  ;;  %364 = vmatprep.mubr.f32.mxu0 %v241_v23 }
  0x47   : > { %1687 = vmatprep.subr.bf16.mxu0 %v1912_v8 }
  0x48   : > { %1710 = vmatpush3.bf16.msra.mxu1 %v2068_v43 }
  0x49   : > { %1711 = vmatprep.subr.bf16.mxu1 %v1912_v8  ;;  %365 = vmatmul.mubr.f32.gmra.mrb[8].mxu0 %v240_v24 }
  0x4a   : > { %1689 = vmatpush3.bf16.msra.mxu0 %v2091_v53  ;;  %369 = vmatprep.mubr.f32.mxu0 %v243_v26 }
  0x4b   : > { %1690 = vmatprep.subr.bf16.mxu0 %v1912_v8 }
  0x4c   : > { %1713 = vmatpush3.bf16.msra.mxu1 %v2091_v53 }
  0x4d   : > { %1714 = vmatprep.subr.bf16.mxu1 %v1912_v8  ;;  %370 = vmatmul.mubr.f32.gmra.mrb[10].mxu0 %v242_v27 }
  0x4e   : > { %1692 = vmatpush3.bf16.msra.mxu0 %v2113_v62  ;;  %374 = vmatprep.mubr.f32.mxu0 %v245_v28  ;;  %v741_v28 = vstv %s740_s27 }
  0x4f   : > { %1693 = vmatprep.subr.bf16.mxu0 %v1912_v8  ;;  %vm742_vm4 = vcmp.eq.s32.totalorder %v741_v28, 1 }
  0x50   : > { %1716 = vmatpush3.bf16.msra.mxu1 %v2113_v62 }
  0x51   : > { %1717 = vmatprep.subr.bf16.mxu1 %v1912_v8  ;;  %375 = vmatmul.mubr.f32.gmra.mrb[12].mxu0 %v244_v29 }
  0x52   : > { %1695 = vmatpush3.bf16.msra.mxu0 %v2135_v7  ;;  %379 = vmatprep.mubr.f32.mxu0 %v247_v30 }
  0x53   : > { %1696 = vmatprep.subr.bf16.mxu0 %v1912_v8 }
  0x54   : > { %1719 = vmatpush3.bf16.msra.mxu1 %v2135_v7 }
  0x55   : > { %1720 = vmatprep.subr.bf16.mxu1 %v1912_v8  ;;  %380 = vmatmul.mubr.f32.gmra.mrb[14].mxu0 %v246_v31 }
  0x56   : > { %1698 = vmatpush3.bf16.msra.mxu0 %v2145_v13  ;;  %1406 = vmatprep.mubr.msk.f32.mxu0 %vm1913_vm0, %v1914_v9 }
  0x57   : > { %1723 = vmatprep.subr.bf16.mxu0 %v1912_v8 }
  0x58   : > { %1722 = vmatpush3.bf16.msra.mxu1 %v2145_v13 }
  0x59   : > { %1747 = vmatprep.subr.bf16.mxu1 %v1912_v8 }
 0x10c   : > { %v1179_v32 = vpop.f32.mrb[0].mxu0 }
 0x10d   : > { %v1180_v33 = vpop.f32.mrb[1].mxu0 }
 0x10e   : > { %v1181_v36 = vadd.f32 %v1180_v33, %v1179_v32  ;;  %v493_v37 = vpop.f32.mrb[0].mxu1 }
 0x10f   : > { %v1373_v38 = vpop.f32.mrb[1].mxu1 }
 0x110   : > { %v392_v39 = vadd.f32 %v1181_v36, %v2211_v35  ;;  %v1182_v40 = vpop.f32.mrb[2].mxu0 }
 0x111   : > { %v1183_v41 = vpop.f32.mrb[3].mxu0 }
 0x112   : > { %v497_v42 = vadd.f32 %v493_v37, %v392_v39  ;;  %v1184_v44 = vadd.f32 %v1183_v41, %v1182_v40  ;;  %v821_v37 = vstv %s820_s29  ;;  %v981_v41 = vstv %s980_s7 }
 0x113   : > { %vm822_vm5 = vcmp.eq.s32.totalorder %v821_v37, 1  ;;  %vm982_vm7 = vcmp.eq.s32.totalorder %v981_v41, 1 }
 0x114   : > { %1871 = vtanh.f32 %v497_v42  ;;  %v1185_v45 = vpop.f32.mrb[4].mxu0  ;;  %v393_v4 = vadd.f32 %v1184_v44, %v2211_v35 }
 0x115   : > { %v1186_v46 = vpop.f32.mrb[5].mxu0 }
 0x116   : > { %v2215_v47 = vadd.f32 %v1186_v46, %v1185_v45 }
 0x118   : > { %v1188_v48 = vpop.f32.mrb[6].mxu0  ;;  %v394_v15 = vadd.f32 %v2215_v47, %v2211_v35 }
 0x119   : > { %v1189_v50 = vpop.f32.mrb[7].mxu0 }
 0x11a   : > { %v2217_v51 = vadd.f32 %v1189_v50, %v1188_v48 }
 0x11c   : > { %v1191_v55 = vpop.f32.mrb[8].mxu0  ;;  %v395_v23 = vadd.f32 %v2217_v51, %v2211_v35 }
 0x11d   : > { %v1192_v56 = vpop.f32.mrb[9].mxu0 }
 0x11e   : > { %v1872_v52 = vpop.eup %1871  ;;  %v2238_v57 = vadd.f32 %v1192_v56, %v1191_v55 }
 0x11f   : > { %v503_v54 = vsel %vm502_vm1, %v1872_v52, %v2155_v16 }
 0x120   : > { %1407 = vmatmul.mubr.f32.vlgmr.msra.gmra.mrb[16].mxu0 %v503_v54  ;;  %v1194_v58 = vpop.f32.mrb[10].mxu0  ;;  %v396_v31 = vadd.f32 %v2238_v57, %v2211_v35 }
 0x121   : > { %1725 = vmatpush3.bf16.msra.mxu0 %v2009_v19  ;;  %1476 = vmatprep.mubr.msk.f32.mxu0 %vm1913_vm0, %v1914_v9  ;;  %v1195_v59 = vpop.f32.mrb[11].mxu0 }
 0x122   : > { %1726 = vmatprep.subr.bf16.mxu0 %v1912_v8  ;;  %v2240_v60 = vadd.f32 %v1195_v59, %v1194_v58 }
 0x124   : > { %v1197_v61 = vpop.f32.mrb[12].mxu0 }
 0x125   : > { %1728 = vmatpush3.bf16.msra.mxu0 %v2024_v25  ;;  %v1198_v63 = vpop.f32.mrb[13].mxu0 }
 0x126   : > { %1729 = vmatprep.subr.bf16.mxu0 %v1912_v8  ;;  %v2242_v0 = vadd.f32 %v1198_v63, %v1197_v61 }
 0x128   : > { %v1200_v1 = vpop.f32.mrb[14].mxu0 }
 0x129   : > { %1731 = vmatpush3.bf16.msra.mxu0 %v2046_v34  ;;  %v1201_v2 = vpop.f32.mrb[15].mxu0 }
 0x12a   : > { %1732 = vmatprep.subr.bf16.mxu0 %v1912_v8  ;;  %v2244_v3 = vadd.f32 %v1201_v2, %v1200_v1 }
 0x12c   : > { %v399_v45 = vadd.f32 %v2244_v3, %v2211_v35 }
 0x12d   : > { %1734 = vmatpush3.bf16.msra.mxu0 %v2068_v43 }
 0x12e   : > { %1735 = vmatprep.subr.bf16.mxu0 %v1912_v8 }
 0x131   : > { %1737 = vmatpush3.bf16.msra.mxu0 %v2091_v53 }
 0x132   : > { %1738 = vmatprep.subr.bf16.mxu0 %v1912_v8 }
 0x135   : > { %1740 = vmatpush3.bf16.msra.mxu0 %v2113_v62 }
 0x136   : > { %1741 = vmatprep.subr.bf16.mxu0 %v1912_v8 }
 0x139   : > { %1743 = vmatpush3.bf16.msra.mxu0 %v2135_v7 }
 0x13a   : > { %1744 = vmatprep.subr.bf16.mxu0 %v1912_v8 }
 0x13d   : > { %1746 = vmatpush3.bf16.msra.mxu0 %v2145_v13 }
 0x13e   : > { %1771 = vmatprep.subr.bf16.mxu0 %v1912_v8 }
 0x1f3   : > { %v572_v5 = vpop.f32.mrb[16].mxu0 }
 0x1f4   : > { %v576_v6 = vadd.f32 %v572_v5, %v393_v4  ;;  %v1408_v10 = vpop.f32.mrb[17].mxu0 }
 0x1f6   : > { %1873 = vtanh.f32 %v576_v6 }
 0x200   : > { %v1874_v12 = vpop.eup %1873 }
 0x201   : > { %v583_v14 = vsel %vm582_vm2, %v1874_v12, %v503_v54 }
 0x202   : > { %1442 = vmatmul.mubr.f32.vlgmr.msra.gmra.mrb[2].mxu1 %v583_v14 }
 0x203   : > { %1749 = vmatpush3.bf16.msra.mxu1 %v2009_v19  ;;  %1511 = vmatprep.mubr.msk.f32.mxu1 %vm1913_vm0, %v1914_v9 }
 0x204   : > { %1750 = vmatprep.subr.bf16.mxu1 %v1912_v8 }
 0x207   : > { %1752 = vmatpush3.bf16.msra.mxu1 %v2024_v25 }
 0x208   : > { %1753 = vmatprep.subr.bf16.mxu1 %v1912_v8 }
 0x20b   : > { %1755 = vmatpush3.bf16.msra.mxu1 %v2046_v34 }
 0x20c   : > { %1756 = vmatprep.subr.bf16.mxu1 %v1912_v8 }
 0x20f   : > { %1758 = vmatpush3.bf16.msra.mxu1 %v2068_v43 }
 0x210   : > { %1759 = vmatprep.subr.bf16.mxu1 %v1912_v8 }
 0x213   : > { %1761 = vmatpush3.bf16.msra.mxu1 %v2091_v53 }
 0x214   : > { %1762 = vmatprep.subr.bf16.mxu1 %v1912_v8 }
 0x217   : > { %1764 = vmatpush3.bf16.msra.mxu1 %v2113_v62 }
 0x218   : > { %1765 = vmatprep.subr.bf16.mxu1 %v1912_v8 }
 0x21b   : > { %1767 = vmatpush3.bf16.msra.mxu1 %v2135_v7 }
 0x21c   : > { %1768 = vmatprep.subr.bf16.mxu1 %v1912_v8 }
 0x21f   : > { %1770 = vmatpush3.bf16.msra.mxu1 %v2145_v13 }
 0x220   : > { %1795 = vmatprep.subr.bf16.mxu1 %v1912_v8 }
 0x2d5   : > { %v652_v16 = vpop.f32.mrb[2].mxu1 }
 0x2d6   : > { %v656_v17 = vadd.f32 %v652_v16, %v394_v15  ;;  %v1443_v18 = vpop.f32.mrb[3].mxu1 }
 0x2d8   : > { %1875 = vtanh.f32 %v656_v17 }
 0x2e2   : > { %v1876_v21 = vpop.eup %1875 }
 0x2e3   : > { %v663_v22 = vsel %vm662_vm3, %v1876_v21, %v583_v14 }
 0x2e4   : > { %1477 = vmatmul.mubr.f32.vlgmr.msra.gmra.mrb[18].mxu0 %v663_v22 }
 0x2e5   : > { %1773 = vmatpush3.bf16.msra.mxu0 %v2009_v19  ;;  %1546 = vmatprep.mubr.msk.f32.mxu0 %vm1913_vm0, %v1914_v9 }
 0x2e6   : > { %1774 = vmatprep.subr.bf16.mxu0 %v1912_v8 }
 0x2e9   : > { %1776 = vmatpush3.bf16.msra.mxu0 %v2024_v25 }
 0x2ea   : > { %1777 = vmatprep.subr.bf16.mxu0 %v1912_v8 }
 0x2ed   : > { %1779 = vmatpush3.bf16.msra.mxu0 %v2046_v34 }
 0x2ee   : > { %1780 = vmatprep.subr.bf16.mxu0 %v1912_v8 }
 0x2f1   : > { %1782 = vmatpush3.bf16.msra.mxu0 %v2068_v43 }
 0x2f2   : > { %1783 = vmatprep.subr.bf16.mxu0 %v1912_v8 }
 0x2f5   : > { %1785 = vmatpush3.bf16.msra.mxu0 %v2091_v53 }
 0x2f6   : > { %1786 = vmatprep.subr.bf16.mxu0 %v1912_v8 }
 0x2f9   : > { %1788 = vmatpush3.bf16.msra.mxu0 %v2113_v62 }
 0x2fa   : > { %1789 = vmatprep.subr.bf16.mxu0 %v1912_v8 }
 0x2fd   : > { %1791 = vmatpush3.bf16.msra.mxu0 %v2135_v7 }
 0x2fe   : > { %1792 = vmatprep.subr.bf16.mxu0 %v1912_v8 }
 0x301   : > { %1794 = vmatpush3.bf16.msra.mxu0 %v2145_v13 }
 0x302   : > { %1819 = vmatprep.subr.bf16.mxu0 %v1912_v8 }
 0x3b7   : > { %v732_v24 = vpop.f32.mrb[18].mxu0 }
 0x3b8   : > { %v736_v26 = vadd.f32 %v732_v24, %v395_v23  ;;  %v1478_v27 = vpop.f32.mrb[19].mxu0 }
 0x3ba   : > { %1877 = vtanh.f32 %v736_v26 }
 0x3c4   : > { %v1878_v29 = vpop.eup %1877 }
 0x3c5   : > { %v743_v30 = vsel %vm742_vm4, %v1878_v29, %v663_v22 }
 0x3c6   : > { %1512 = vmatmul.mubr.f32.vlgmr.msra.gmra.mrb[4].mxu1 %v743_v30 }
 0x3c7   : > { %1797 = vmatpush3.bf16.msra.mxu1 %v2009_v19  ;;  %1581 = vmatprep.mubr.msk.f32.mxu1 %vm1913_vm0, %v1914_v9 }
 0x3c8   : > { %1798 = vmatprep.subr.bf16.mxu1 %v1912_v8 }
 0x3cb   : > { %1800 = vmatpush3.bf16.msra.mxu1 %v2024_v25 }
 0x3cc   : > { %1801 = vmatprep.subr.bf16.mxu1 %v1912_v8 }
 0x3cf   : > { %1803 = vmatpush3.bf16.msra.mxu1 %v2046_v34 }
 0x3d0   : > { %1804 = vmatprep.subr.bf16.mxu1 %v1912_v8 }
 0x3d3   : > { %1806 = vmatpush3.bf16.msra.mxu1 %v2068_v43 }
 0x3d4   : > { %1807 = vmatprep.subr.bf16.mxu1 %v1912_v8 }
 0x3d7   : > { %1809 = vmatpush3.bf16.msra.mxu1 %v2091_v53 }
 0x3d8   : > { %1810 = vmatprep.subr.bf16.mxu1 %v1912_v8 }
 0x3db   : > { %1812 = vmatpush3.bf16.msra.mxu1 %v2113_v62 }
 0x3dc   : > { %1813 = vmatprep.subr.bf16.mxu1 %v1912_v8 }
 0x3df   : > { %1815 = vmatpush3.bf16.msra.mxu1 %v2135_v7 }
 0x3e0   : > { %1816 = vmatprep.subr.bf16.mxu1 %v1912_v8 }
 0x3e3   : > { %1818 = vmatpush3.bf16.msra.mxu1 %v2145_v13 }
 0x499   : > { %v812_v32 = vpop.f32.mrb[4].mxu1 }
 0x49a   : > { %v816_v33 = vadd.f32 %v812_v32, %v396_v31  ;;  %v1513_v36 = vpop.f32.mrb[5].mxu1 }
 0x49c   : > { %1879 = vtanh.f32 %v816_v33 }
 0x4a6   : > { %v1880_v38 = vpop.eup %1879 }
 0x4a7   : > { %v823_v39 = vsel %vm822_vm5, %v1880_v38, %v743_v30 }
 0x4a8   : > { %1547 = vmatmul.mubr.f32.vlgmr.msra.gmra.mrb[20].mxu0 %v823_v39 }
 0x4a9   : > { %1821 = vmatpush3.bf16.msra.mxu0 %v2009_v19  ;;  %1616 = vmatprep.mubr.msk.f32.mxu0 %vm1913_vm0, %v1914_v9  ;;  %v397_v9 = vadd.f32 %v2240_v60, %v2211_v35 }
 0x4aa   : > { %1822 = vmatprep.subr.bf16.mxu0 %v1912_v8 }
 0x4ad   : > { %1824 = vmatpush3.bf16.msra.mxu0 %v2024_v25 }
 0x4ae   : > { %1825 = vmatprep.subr.bf16.mxu0 %v1912_v8 }
 0x4b1   : > { %1827 = vmatpush3.bf16.msra.mxu0 %v2046_v34 }
 0x4b2   : > { %1828 = vmatprep.subr.bf16.mxu0 %v1912_v8 }
 0x4b5   : > { %1830 = vmatpush3.bf16.msra.mxu0 %v2068_v43  ;;  %v901_v43 = vstv %s900_s5 }
 0x4b6   : > { %1831 = vmatprep.subr.bf16.mxu0 %v1912_v8  ;;  %vm902_vm6 = vcmp.eq.s32.totalorder %v901_v43, 1 }
 0x4b9   : > { %1833 = vmatpush3.bf16.msra.mxu0 %v2091_v53 }
 0x4ba   : > { %1834 = vmatprep.subr.bf16.mxu0 %v1912_v8 }
 0x4bd   : > { %1836 = vmatpush3.bf16.msra.mxu0 %v2113_v62 }
 0x4be   : > { %1837 = vmatprep.subr.bf16.mxu0 %v1912_v8 }
 0x4c1   : > { %1839 = vmatpush3.bf16.msra.mxu0 %v2135_v7 }
 0x4c2   : > { %1840 = vmatprep.subr.bf16.mxu0 %v1912_v8  ;;  %v398_v8 = vadd.f32 %v2242_v0, %v2211_v35 }
 0x4c5   : > { %1842 = vmatpush3.bf16.msra.mxu0 %v2145_v13 }
 0x57b   : > { %v892_v19 = vpop.f32.mrb[20].mxu0 }
 0x57c   : > { %v896_v25 = vadd.f32 %v892_v19, %v397_v9  ;;  %v1548_v34 = vpop.f32.mrb[21].mxu0 }
 0x57e   : > { %1881 = vtanh.f32 %v896_v25 }
 0x588   : > { %v1882_v53 = vpop.eup %1881 }
 0x589   : > { %v903_v62 = vsel %vm902_vm6, %v1882_v53, %v823_v39 }
 0x58a   : > { %1582 = vmatmul.mubr.f32.vlgmr.msra.gmra.mrb[6].mxu1 %v903_v62 }
 0x65d   : > { %v972_v7 = vpop.f32.mrb[6].mxu1 }
 0x65e   : > { %v976_v13 = vadd.f32 %v972_v7, %v398_v8  ;;  %v1583_v40 = vpop.f32.mrb[7].mxu1 }
 0x660   : > { %1883 = vtanh.f32 %v976_v13 }
 0x66a   : > { %v1884_v42 = vpop.eup %1883 }
 0x66b   : > { %v983_v44 = vsel %vm982_vm7, %v1884_v42, %v903_v62 }
 0x66c   : > { %1617 = vmatmul.mubr.f32.vlgmr.msra.gmra.mrb[22].mxu0 %v983_v44 }
 0x73f   : > { %v1052_v46 = vpop.f32.mrb[22].mxu0 }
 0x740   : > { %v1056_v47 = vadd.f32 %v1052_v46, %v399_v45  ;;  %v1618_v48 = vpop.f32.mrb[23].mxu0 }
 0x742   : > { %1885 = vtanh.f32 %v1056_v47 }
 0x74c   : > { %v1886_v50 = vpop.eup %1885 }
 0x74d   : > { %v1063_v51 = vsel %vm1062_vm8, %v1886_v50, %v983_v44 }
 0x74e   : > { %1064 = vst [vmem:[%s2352_s4] sm:$0xff] %v1063_v51 }
 0x74f PF: > { %s14_s17 = sadd.s32 1, %s1909_s17   ;;  %s2353_s15 = smov %s1905_s16 }
 0x750   : > { %p11_p0 = scmp.ge.s32.totalorder %s14_s17, 5   ;;  %s2354_s16 = smov %s2356_s18 }
 0x752   :  { %13 = sbr.rel (!%p11_p0) target bundleno = 2 (0x2), region = 77 }

</bundles_post_ra>
